<compile_context>
chip_gen: v5e
topology: v5e:2x2
jax: 0.10.0
libtpu: 0.0.40
codegen_flags: <defaults>
</compile_context>

<pallas_src>
import functools

import jax
import jax.numpy as jnp
import numpy as np
from jax.experimental import pallas as pl
from jax.experimental.pallas import tpu as pltpu


def _round_up(x, m):
    return ((x + m - 1) // m) * m


def _choose_tile_n(n, c, dtype_bytes, cap=None):
    # Rows of the pick head live on the lane axis -> tile must be a multiple of
    # 128. Keep one [C, tile_n] logits buffer under ~8 MiB (double-buffered it is
    # ~16 MiB, within the 32 MiB vmem_limit set below and v7x's 64 MiB VMEM) and
    # cap at 16K rows.
    budget_rows = (8 << 20) // (max(c, 1) * max(dtype_bytes, 1))
    budget_rows = max(128, (budget_rows // 128) * 128)
    tile = min(_round_up(n, 128), budget_rows, 16384)
    if cap is not None:
        tile = min(tile, max(128, (cap // 128) * 128))
    return tile


def _pickplace_loss_kernel(alpha_ref, logits_ref, tgt_ref, place_ref, out_ref,
                           acc_ref, *, n_rows, tile_n, m, d):
    i = pl.program_id(0)

    @pl.when(i == 0)
    def _init():
        acc_ref[...] = jnp.zeros_like(acc_ref)

    # ---- PickLoss tile: per-row CE terms; rows on lanes, classes on sublanes ----
    logits = logits_ref[...].astype(jnp.float32)                    # [C, tile_n]
    c, tn = logits.shape
    mx = jnp.max(logits, axis=0, keepdims=True)                     # [1, tile_n]
    lse = jnp.log(jnp.sum(jnp.exp(logits - mx), axis=0, keepdims=True)) + mx
    cls = jax.lax.broadcasted_iota(jnp.int32, (c, tn), 0)
    # NOTE: a target id outside [0, C) silently contributes 0 (PyTorch would raise).
    onehot = cls == tgt_ref[...]                                    # [C, tile_n]
    picked = jnp.sum(jnp.where(onehot, logits, 0.0), axis=0, keepdims=True)
    terms = lse - picked                                            # [1, tile_n]
    # Wrapper pads N to a tile multiple (defined data); only mask the reduced
    # per-row terms so padded rows contribute 0. Cheap: single-row lane mask.
    col_ids = i * tile_n + jax.lax.broadcasted_iota(jnp.int32, (1, tn), 1)
    acc_ref[...] += jnp.where(col_ids < n_rows, terms, 0.0)

    # ---- finalize: mean, PlaceLoss (SmoothL1, beta=1), alpha-blend ----
    @pl.when(i == pl.num_programs(0) - 1)
    def _finalize():
        alpha = alpha_ref[0, 0]
        pick_loss = jnp.sum(acc_ref[...]) * (1.0 / n_rows)
        place = place_ref[:m, :].astype(jnp.float32)                # [M, D] predictions
        ptgt = place_ref[m:m + 1, :].astype(jnp.float32)            # [1, D] target row
        diff = place - ptgt
        ad = jnp.abs(diff)
        elt = jnp.where(ad < 1.0, 0.5 * diff * diff, ad - 0.5)
        place_loss = jnp.sum(elt) * (1.0 / (m * d))
        out_ref[0, 0] = alpha * pick_loss + (1.0 - alpha) * place_loss


@functools.partial(jax.jit, static_argnames=("tile_cap",))
def _pick_place_loss_impl(alpha_arr, pick_logits, action_instance, end_pose_list,
                          place_pred, tile_cap=None):
    pick_logits = jnp.asarray(pick_logits)           # dtype preserved (bf16 accepted)
    place_pred = jnp.asarray(place_pred)
    n, c = pick_logits.shape
    m, d = place_pred.shape
    assert d in (3, 7)

    # Glue (torch.cat + column select + transpose/pad) stays inside this jit so it
    # fuses with the pallas_call's inputs (no extra HBM round trips).
    pick_target = jnp.concatenate(
        [jnp.asarray(t, jnp.int32) for t in action_instance], axis=0)       # [N]
    end_pose = jnp.concatenate(
        [jnp.asarray(t, jnp.float32) for t in end_pose_list], axis=0)
    # Faithful to PyTorch: select the single column at index D, then broadcast the
    # resulting [M_t] vector against [M, D] (legal only when M_t == D or M_t == 1).
    place_target = jnp.broadcast_to(end_pose[:, d].reshape(1, -1), (1, d))
    # Pack predictions + target row into one array -> a single resident block.
    place_packed = jnp.concatenate(
        [place_pred.astype(jnp.float32), place_target], axis=0)             # [M+1, D]

    dtype_bytes = pick_logits.dtype.itemsize
    tile_n = _choose_tile_n(n, c, dtype_bytes, tile_cap)
    num_tiles = pl.cdiv(n, tile_n)
    n_pad = num_tiles * tile_n

    # Lane-dense layout: classes on sublanes, decision rows on lanes; pad rows up
    # to a tile multiple so no kernel step reads undefined block padding.
    logits_t = jnp.pad(pick_logits.T, ((0, 0), (0, n_pad - n)))             # [C, N_pad]
    target_row = jnp.pad(pick_target, (0, n_pad - n)).reshape(1, n_pad)     # [1, N_pad]

    kernel = functools.partial(_pickplace_loss_kernel,
                               n_rows=n, tile_n=tile_n, m=m, d=d)
    loss = pl.pallas_call(
        kernel,
        out_shape=jax.ShapeDtypeStruct((1, 1), jnp.float32),
        grid=(num_tiles,),
        in_specs=[
            pl.BlockSpec(memory_space=pltpu.MemorySpace.SMEM),       # alpha scalar
            pl.BlockSpec((c, tile_n), lambda i: (0, i)),             # logits tile (rows on lanes)
            pl.BlockSpec((1, tile_n), lambda i: (0, i)),             # targets row tile
            pl.BlockSpec((m + 1, d), lambda i: (0, 0)),              # packed place (resident)
        ],
        out_specs=pl.BlockSpec(memory_space=pltpu.MemorySpace.SMEM), # scalar stays in SMEM
        scratch_shapes=[pltpu.VMEM((1, tile_n), jnp.float32)],       # lane-wise CE accumulator
        compiler_params=pltpu.CompilerParams(
            dimension_semantics=("arbitrary",),                      # axis carries the acc
            vmem_limit_bytes=32 * 1024 * 1024),
        cost_estimate=pl.CostEstimate(
            flops=5 * n * c,
            transcendentals=n * c + n,
            bytes_accessed=n * c * dtype_bytes + n * 4 + (m + 1) * d * 4 + 8),
    )(alpha_arr, logits_t, target_row, place_packed)
    return loss[0, 0]


def pick_place_loss(out, target, alpha, *, tile_cap=None):
    """JAX/Pallas equivalent of PickPlaceLoss.forward (alpha is the ctor hyperparam)."""
    alpha_arr = jnp.asarray(alpha, jnp.float32).reshape(1, 1)
    return _pick_place_loss_impl(alpha_arr, out["pick"],
                                 tuple(target["action_instance"]),
                                 tuple(target["end_pose"]),
                                 out["place"], tile_cap=tile_cap)


def _reference(out, target, alpha):
    logits = jnp.asarray(out["pick"], jnp.float32)
    tgt = jnp.concatenate([jnp.asarray(t, jnp.int32) for t in target["action_instance"]])
    lse = jax.scipy.special.logsumexp(logits, axis=1)
    pick = jnp.mean(lse - logits[jnp.arange(logits.shape[0]), tgt])
    place = jnp.asarray(out["place"], jnp.float32)
    d = place.shape[-1]
    ep = jnp.concatenate([jnp.asarray(t, jnp.float32) for t in target["end_pose"]],
                         axis=0)[:, d]
    diff = place - ep                                               # broadcast [M] vs [M, D]
    ad = jnp.abs(diff)
    sl1 = jnp.mean(jnp.where(ad < 1.0, 0.5 * diff * diff, ad - 0.5))
    return alpha * pick + (1 - alpha) * sl1


if __name__ == "__main__":
    key = jax.random.PRNGKey(0)
    k1, k2, k3, k4 = jax.random.split(key, 4)

    # Pick head: 520 decisions x 24 candidate instances. With the raised tile
    # budget this runs as a single grid step (640 padded lanes x 24 sublanes).
    N, C = 520, 24
    # Place head: the module's own broadcasting requires end-pose rows == D (or 1).
    M, D, P = 3, 3, 8
    alpha = 0.7

    out = {
        "pick": jax.random.normal(k1, (N, C), jnp.float32),
        "place": jax.random.normal(k2, (M, D), jnp.float32),
    }
    # targets are lists of per-sequence tensors (concatenated inside, as in the module)
    target = {
        "action_instance": [
            jax.random.randint(k3, (N // 2,), 0, C, jnp.int32),
            jax.random.randint(k4, (N - N // 2,), 0, C, jnp.int32),
        ],
        "end_pose": [
            jax.random.normal(k3, (1, P), jnp.float32),
            jax.random.normal(k4, (M - 1, P), jnp.float32),
        ],
    }

    # (alpha=0.7, None) and (alpha=0.3, None) share one compile (alpha is SMEM);
    # tile_cap=128 forces a 5-step grid to exercise the VMEM accumulator + tail mask.
    for a, cap in ((alpha, None), (0.3, None), (alpha, 128)):
        loss = pick_place_loss(out, target, a, tile_cap=cap)
        jax.block_until_ready(loss)
        ref = _reference(out, target, a)
        assert np.allclose(np.asarray(loss), np.asarray(ref),
                           rtol=5e-5, atol=1e-5), (a, cap, loss, ref)
    print("KERNEL_OK")
</pallas_src>

<mosaic_0001>
module attributes {stable_mosaic.version = 11 : i64} {
  func.func @_pickplace_loss_kernel(%arg0: i32, %arg1: memref<1x1xf32, #tpu.memory_space<smem>>, %arg2: memref<24x640xf32, #tpu.memory_space<vmem>>, %arg3: memref<1x640xi32, #tpu.memory_space<vmem>>, %arg4: memref<4x3xf32, #tpu.memory_space<vmem>>, %arg5: memref<1x1xf32, #tpu.memory_space<smem>>, %arg6: memref<1x640xf32, #tpu.memory_space<vmem>>) attributes {dimension_semantics = [#tpu.dimension_semantics<arbitrary>], iteration_bounds = array<i64: 1>, scalar_prefetch = 0 : i64, scratch_operands = 1 : i64, tpu.core_type = #tpu.core_type<tc>, window_params = [{transform_indices = @transform_0, window_bounds = array<i64: 1, 1>}, {transform_indices = @transform_1, window_bounds = array<i64: 24, 640>}, {transform_indices = @transform_2, window_bounds = array<i64: 1, 640>}, {pipeline_mode = #tpu.pipeline_mode<synchronous>, transform_indices = @transform_3, window_bounds = array<i64: 4, 3>}, {transform_indices = @transform_4, window_bounds = array<i64: 1, 1>}]} {
    %c0_i32 = arith.constant 0 : i32
    %0 = arith.cmpi eq, %arg0, %c0_i32 : i32
    %1 = arith.extui %0 : i1 to i32
    %c0_i32_0 = arith.constant 0 : i32
    %2 = arith.cmpi ne, %1, %c0_i32_0 : i32
    scf.if %2 {
      %cst_14 = arith.constant 0.000000e+00 : f32
      %36 = vector.broadcast %cst_14 : f32 to vector<1x640xf32>
      %c0_15 = arith.constant 0 : index
      %c0_16 = arith.constant 0 : index
      %37 = vector.load %arg6[%c0_15, %c0_16] : memref<1x640xf32, #tpu.memory_space<vmem>>, vector<1x640xf32>
      tpu.vector_store %arg6[%c0_15, %c0_16], %36 {strides = array<i32>} : memref<1x640xf32, #tpu.memory_space<vmem>>, vector<1x640xf32>,
    } else {
    }
    %c0 = arith.constant 0 : index
    %c0_1 = arith.constant 0 : index
    %3 = vector.load %arg2[%c0, %c0_1] : memref<24x640xf32, #tpu.memory_space<vmem>>, vector<24x640xf32>
    %cst = arith.constant dense<0xFF800000> : vector<640xf32>
    %4 = vector.multi_reduction <maximumf>, %3, %cst [0] : vector<24x640xf32> to vector<640xf32>
    %5 = vector.shape_cast %4 : vector<640xf32> to vector<1x640xf32>
    %6 = vector.broadcast %5 : vector<1x640xf32> to vector<24x640xf32>
    %7 = arith.subf %3, %6 : vector<24x640xf32>
    %8 = math.exp %7 : vector<24x640xf32>
    %cst_2 = arith.constant dense<0.000000e+00> : vector<640xf32>
    %9 = vector.multi_reduction <add>, %8, %cst_2 [0] : vector<24x640xf32> to vector<640xf32>
    %10 = vector.shape_cast %9 : vector<640xf32> to vector<1x640xf32>
    %11 = math.log %10 : vector<1x640xf32>
    %12 = arith.addf %11, %5 : vector<1x640xf32>
    %13 = tpu.iota {dimensions = array<i32: 0>} : vector<24x640xi32>
    %c0_3 = arith.constant 0 : index
    %c0_4 = arith.constant 0 : index
    %14 = vector.load %arg3[%c0_3, %c0_4] : memref<1x640xi32, #tpu.memory_space<vmem>>, vector<1x640xi32>
    %15 = vector.broadcast %14 : vector<1x640xi32> to vector<24x640xi32>
    %16 = arith.cmpi eq, %13, %15 : vector<24x640xi32>
    %cst_5 = arith.constant 0.000000e+00 : f32
    %17 = vector.broadcast %cst_5 : f32 to vector<24x640xf32>
    %18 = arith.select %16, %3, %17 : vector<24x640xi1>, vector<24x640xf32>
    %cst_6 = arith.constant dense<0.000000e+00> : vector<640xf32>
    %19 = vector.multi_reduction <add>, %18, %cst_6 [0] : vector<24x640xf32> to vector<640xf32>
    %20 = vector.shape_cast %19 : vector<640xf32> to vector<1x640xf32>
    %21 = arith.subf %12, %20 : vector<1x640xf32>
    %c640_i32 = arith.constant 640 : i32
    %22 = arith.muli %arg0, %c640_i32 : i32
    %23 = tpu.iota {dimensions = array<i32: 1>} : vector<1x640xi32>
    %24 = vector.broadcast %22 : i32 to vector<1x640xi32>
    %25 = arith.addi %24, %23 : vector<1x640xi32>
    %c0_7 = arith.constant 0 : index
    %c0_8 = arith.constant 0 : index
    %26 = vector.load %arg6[%c0_7, %c0_8] : memref<1x640xf32, #tpu.memory_space<vmem>>, vector<1x640xf32>
    %c520_i32 = arith.constant 520 : i32
    %27 = vector.broadcast %c520_i32 : i32 to vector<1x640xi32>
    %28 = arith.cmpi slt, %25, %27 : vector<1x640xi32>
    %cst_9 = arith.constant 0.000000e+00 : f32
    %29 = vector.broadcast %cst_9 : f32 to vector<1x640xf32>
    %30 = arith.select %28, %21, %29 : vector<1x640xi1>, vector<1x640xf32>
    %31 = arith.addf %26, %30 : vector<1x640xf32>
    %c0_10 = arith.constant 0 : index
    %c0_11 = arith.constant 0 : index
    %32 = vector.load %arg6[%c0_10, %c0_11] : memref<1x640xf32, #tpu.memory_space<vmem>>, vector<1x640xf32>
    tpu.vector_store %arg6[%c0_10, %c0_11], %31 {strides = array<i32>} : memref<1x640xf32, #tpu.memory_space<vmem>>, vector<1x640xf32>,
    %c0_i32_12 = arith.constant 0 : i32
    %33 = arith.cmpi eq, %arg0, %c0_i32_12 : i32
    %34 = arith.extui %33 : i1 to i32
    %c0_i32_13 = arith.constant 0 : i32
    %35 = arith.cmpi ne, %34, %c0_i32_13 : i32
    scf.if %35 {
      %c0_14 = arith.constant 0 : index
      %c0_15 = arith.constant 0 : index
      %36 = memref.load %arg1[%c0_14, %c0_15] : memref<1x1xf32, #tpu.memory_space<smem>>
      %c0_16 = arith.constant 0 : index
      %c0_17 = arith.constant 0 : index
      %37 = vector.load %arg6[%c0_16, %c0_17] : memref<1x640xf32, #tpu.memory_space<vmem>>, vector<1x640xf32>
      %38 = vector.shape_cast %37 : vector<1x640xf32> to vector<1x1x640xf32>
      %cst_18 = arith.constant dense<0.000000e+00> : vector<1xf32>
      %39 = vector.multi_reduction <add>, %38, %cst_18 [1, 2] : vector<1x1x640xf32> to vector<1xf32>
      %40 = vector.shape_cast %39 : vector<1xf32> to vector<1x1x1xf32>
      %41 = vector.extract %40[0, 0, 0] : f32 from vector<1x1x1xf32>
      %cst_19 = arith.constant 0.00192307692 : f32
      %42 = arith.mulf %41, %cst_19 : f32
      %c0_20 = arith.constant 0 : index
      %c0_21 = arith.constant 0 : index
      %43 = vector.load %arg4[%c0_20, %c0_21] : memref<4x3xf32, #tpu.memory_space<vmem>>, vector<3x3xf32>
      %c3 = arith.constant 3 : index
      %c0_22 = arith.constant 0 : index
      %44 = vector.load %arg4[%c3, %c0_22] : memref<4x3xf32, #tpu.memory_space<vmem>>, vector<1x3xf32>
      %45 = vector.broadcast %44 : vector<1x3xf32> to vector<3x3xf32>
      %46 = arith.subf %43, %45 : vector<3x3xf32>
      %47 = math.absf %46 : vector<3x3xf32>
      %cst_23 = arith.constant 1.000000e+00 : f32
      %48 = vector.broadcast %cst_23 : f32 to vector<3x3xf32>
      %49 = arith.cmpf olt, %47, %48 : vector<3x3xf32>
      %cst_24 = arith.constant 5.000000e-01 : f32
      %50 = vector.broadcast %cst_24 : f32 to vector<3x3xf32>
      %51 = arith.mulf %50, %46 : vector<3x3xf32>
      %52 = arith.mulf %51, %46 : vector<3x3xf32>
      %cst_25 = arith.constant 5.000000e-01 : f32
      %53 = vector.broadcast %cst_25 : f32 to vector<3x3xf32>
      %54 = arith.subf %47, %53 : vector<3x3xf32>
      %55 = arith.select %49, %52, %54 : vector<3x3xi1>, vector<3x3xf32>
      %56 = vector.shape_cast %55 : vector<3x3xf32> to vector<1x3x3xf32>
      %cst_26 = arith.constant dense<0.000000e+00> : vector<1xf32>
      %57 = vector.multi_reduction <add>, %56, %cst_26 [1, 2] : vector<1x3x3xf32> to vector<1xf32>
      %58 = vector.shape_cast %57 : vector<1xf32> to vector<1x1x1xf32>
      %59 = vector.extract %58[0, 0, 0] : f32 from vector<1x1x1xf32>
      %cst_27 = arith.constant 0.111111112 : f32
      %60 = arith.mulf %59, %cst_27 : f32
      %61 = arith.mulf %36, %42 : f32
      %cst_28 = arith.constant 1.000000e+00 : f32
      %62 = arith.subf %cst_28, %36 : f32
      %63 = arith.mulf %62, %60 : f32
      %64 = arith.addf %61, %63 : f32
      %c0_29 = arith.constant 0 : index
      %c0_30 = arith.constant 0 : index
      %65 = memref.load %arg5[%c0_29, %c0_30] : memref<1x1xf32, #tpu.memory_space<smem>>
      memref.store %64, %arg5[%c0_29, %c0_30] : memref<1x1xf32, #tpu.memory_space<smem>>
    } else {
    }
    return
  }
  func.func @transform_0(%arg0: i32) -> (i32, i32) {
    %c0_i32 = arith.constant 0 : i32
    %c0_i32_0 = arith.constant 0 : i32
    %c0_i32_1 = arith.constant 0 : i32
    return %c0_i32, %c0_i32_0 : i32, i32
  }
  func.func @transform_1(%arg0: i32) -> (i32, i32) {
    %c0_i32 = arith.constant 0 : i32
    %c0_i32_0 = arith.constant 0 : i32
    return %c0_i32, %arg0 : i32, i32
  }
  func.func @transform_2(%arg0: i32) -> (i32, i32) {
    %c0_i32 = arith.constant 0 : i32
    %c0_i32_0 = arith.constant 0 : i32
    return %c0_i32, %arg0 : i32, i32
  }
  func.func @transform_3(%arg0: i32) -> (i32, i32) {
    %c0_i32 = arith.constant 0 : i32
    %c0_i32_0 = arith.constant 0 : i32
    %c0_i32_1 = arith.constant 0 : i32
    return %c0_i32, %c0_i32_0 : i32, i32
  }
  func.func @transform_4(%arg0: i32) -> (i32, i32) {
    %c0_i32 = arith.constant 0 : i32
    %c0_i32_0 = arith.constant 0 : i32
    %c0_i32_1 = arith.constant 0 : i32
    return %c0_i32, %c0_i32_0 : i32, i32
  }
}

</mosaic_0001>

<bundles_post_ra>
// kernel: _pick_place_loss_impl.1
= control target key start
LH: loop header
LB: loop body
LE: loop exit
PB: predicated region body
PF: predicated region fallthrough
CT: control target
= control target key end

     0   :  { %v23_v0 = vlaneseq  ;;  %v456_v12 = vmov 0.0   ;;  %s737_s0 = inlined_call_operand.<no memory space> [shape: f32[1,1], index: 0, kind: input, shape index: {}]   ;;  %s738_s1 = inlined_call_operand.vmem [shape: f32[24,640], index: 1, kind: input, shape index: {}]   ;;  %s739_s2 = inlined_call_operand.vmem [shape: s32[1,640], index: 2, kind: input, shape index: {}]   ;;  %s740_s3 = inlined_call_operand.vmem [shape: f32[4,3], index: 3, kind: input, shape index: {}]   ;;  %s741_s4 = inlined_call_operand.hbm [shape: f32[1,1], index: 4, kind: output, shape index: {}]  }
   0x1   :  { %v486_v1 = vld [vmem:[%s738_s1] sm:$0xff]  ;;  %v491_v2 = vld [vmem:[%s738_s1 + $0x8] sm:$0xff]  ;;  %v496_v3 = vld [vmem:[%s738_s1 + $0x10] sm:$0xff] }
   0x2   :  { %v501_v4 = vld [vmem:[%s738_s1 + $0x18] sm:$0xff]  ;;  %v506_v5 = vld [vmem:[%s738_s1 + $0x20] sm:$0xff]  ;;  %v511_v6 = vld [vmem:[%s738_s1 + $0x28] sm:$0xff]  ;;  %vm514_vm0 = vcmp.lt.s32.totalorder %v23_v0, 640 }
   0x3   :  { %v521_v8 = vld [vmem:[%s738_s1 + $0x30] sm:$0xff]  ;;  %v526_v9 = vld [vmem:[%s738_s1 + $0x38] sm:$0xff]  ;;  %v531_v10 = vld [vmem:[%s738_s1 + $0x40] sm:$0xff]  ;;  %v43_v11 = vmax.f32 %v486_v1, %v511_v6  ;;  %27 = vst.msk [vmem:[#allocation2] sm:$0x1f] %vm514_vm0, %v456_v12 }
   0x4   :  { %v540_v13 = vld [vmem:[%s738_s1 + $0x48] sm:$0xff]  ;;  %v545_v14 = vld [vmem:[%s738_s1 + $0x50] sm:$0xff]  ;;  %v550_v15 = vld [vmem:[%s738_s1 + $0x58] sm:$0xff]  ;;  %v51_v16 = vmax.f32 %v491_v2, %v521_v8  ;;  %v59_v17 = vmax.f32 %v496_v3, %v526_v9  ;;  %v67_v18 = vmax.f32 %v501_v4, %v531_v10 }
   0x5   :  { %v561_v19 = vld [vmem:[%s738_s1 + $0x60] sm:$0xff]  ;;  %v566_v20 = vld [vmem:[%s738_s1 + $0x68] sm:$0xff]  ;;  %v571_v21 = vld [vmem:[%s738_s1 + $0x70] sm:$0xff]  ;;  %v44_v22 = vmax.f32 %v43_v11, %v545_v14  ;;  %v75_v23 = vmax.f32 %v506_v5, %v540_v13 }
   0x6   :  { %v52_v24 = vmax.f32 %v51_v16, %v550_v15  ;;  %v60_v25 = vmax.f32 %v59_v17, %v561_v19  ;;  %v68_v26 = vmax.f32 %v67_v18, %v566_v20 }
   0x7   :  { %10 = vsyncpa [#allocation5], 0  ;;  %v45_v27 = vrot.slane %v44_v22, 4  ;;  %v76_v28 = vmax.f32 %v75_v23, %v571_v21  ;;  %s374_s26 = ssub.f32 1.0, %s737_s0  ;;  %s384_s5 = sshll.u32 %s741_s4, 4  ;;  %s385_s5 = int_to_ptr.hbm [resolvable:$true] %s384_s5 }
   0x8   :  { %v53_v29 = vrot.slane %v52_v24, 4  ;;  %v61_v30 = vrot.slane %v60_v25, 4  ;;  %v69_v31 = vrot.slane %v68_v26, 4  ;;  %s457_s11 = smov [#allocation4]  }
   0x9   :  { %v46_v32 = vmax.f32 %v44_v22, %v45_v27  ;;  %v77_v33 = vrot.slane %v76_v28, 4 }
   0xa   :  { %v54_v34 = vmax.f32 %v52_v24, %v53_v29  ;;  %v62_v35 = vmax.f32 %v60_v25, %v61_v30  ;;  %v70_v36 = vmax.f32 %v68_v26, %v69_v31  ;;  %v615_v29 = vshrl.u32 %v23_v0, 7 }
   0xb   :  { %v47_v37 = vrot.slane %v46_v32, 2  ;;  %v78_v38 = vmax.f32 %v76_v28, %v77_v33  ;;  %v187_v33 = vld [vmem:[%s739_s2] sm:$0x1f] }
   0xc   :  { %v55_v39 = vrot.slane %v54_v34, 2  ;;  %v63_v40 = vrot.slane %v62_v35, 2  ;;  %v71_v41 = vrot.slane %v70_v36, 2 }
   0xd   :  { %v48_v42 = vmax.f32 %v46_v32, %v47_v37  ;;  %v79_v43 = vrot.slane %v78_v38, 2 }
   0xe   :  { %v56_v44 = vmax.f32 %v54_v34, %v55_v39  ;;  %v64_v45 = vmax.f32 %v62_v35, %v63_v40  ;;  %v72_v46 = vmax.f32 %v70_v36, %v71_v41  ;;  %v188_v39 = vperm.slane %v187_v33, 0 }
   0xf   :  { %v49_v47 = vrot.slane %v48_v42, 1  ;;  %v80_v48 = vmax.f32 %v78_v38, %v79_v43  ;;  %v189_v40 = vperm.slane %v187_v33, 1  ;;  %v190_v41 = vperm.slane %v187_v33, 2 }
  0x10   :  { %v57_v49 = vrot.slane %v56_v44, 1  ;;  %v65_v50 = vrot.slane %v64_v45, 1  ;;  %v73_v51 = vrot.slane %v72_v46, 1  ;;  %vm193_vm1 = vcmp.eq.s32.totalorder %v615_v29, %v188_v39 }
  0x11   :  { %v580_v52 = vmax.f32 %v48_v42, %v49_v47  ;;  %v81_v53 = vrot.slane %v80_v48, 1  ;;  %v626_v42 = vperm.slane %v187_v33, 3  ;;  %vm194_vm3 = vcmp.eq.s32.totalorder %v615_v29, %v189_v40 }
  0x12   :  { %v582_v54 = vmax.f32 %v56_v44, %v57_v49  ;;  %v584_v55 = vmax.f32 %v64_v45, %v65_v50  ;;  %v586_v56 = vmax.f32 %v72_v46, %v73_v51  ;;  %v629_v45 = vadd.s32 8, %v615_v29 }
  0x13   :  { %v588_v57 = vmax.f32 %v80_v48, %v81_v53  ;;  %v83_v58 = vsub.f32 %v486_v1, %v580_v52  ;;  %v88_v63 = vsub.f32 %v511_v6, %v580_v52  ;;  %v93_v25 = vsub.f32 %v545_v14, %v580_v52 }
  0x14   :  { %v84_v59 = vsub.f32 %v491_v2, %v582_v54  ;;  %v85_v60 = vsub.f32 %v496_v3, %v584_v55  ;;  %v86_v61 = vsub.f32 %v501_v4, %v586_v56  ;;  %v89_v11 = vsub.f32 %v521_v8, %v582_v54 }
  0x15   :  { %v87_v62 = vsub.f32 %v506_v5, %v588_v57  ;;  %v98_v12 = vmul.f32 1.442695, %v83_v58  ;;  %v90_v18 = vsub.f32 %v526_v9, %v584_v55  ;;  %v91_v22 = vsub.f32 %v531_v10, %v586_v56 }
  0x16   :  { %v100_v16 = vmul.f32 1.442695, %v84_v59  ;;  %v102_v17 = vmul.f32 1.442695, %v85_v60  ;;  %v104_v23 = vmul.f32 1.442695, %v86_v61  ;;  %v92_v24 = vsub.f32 %v540_v13, %v588_v57 }
  0x17   :  { %402 = vpow2.f32 %v98_v12  ;;  %v106_v26 = vmul.f32 1.442695, %v87_v62  ;;  %v94_v27 = vsub.f32 %v550_v15, %v582_v54  ;;  %v108_v28 = vmul.f32 1.442695, %v88_v63 }
  0x18   :  { %404 = vpow2.f32 %v100_v16  ;;  %v95_v30 = vsub.f32 %v561_v19, %v584_v55  ;;  %v96_v31 = vsub.f32 %v566_v20, %v586_v56  ;;  %v110_v32 = vmul.f32 1.442695, %v89_v11 }
  0x19   :  { %406 = vpow2.f32 %v102_v17  ;;  %v97_v34 = vsub.f32 %v571_v21, %v588_v57  ;;  %v112_v35 = vmul.f32 1.442695, %v90_v18  ;;  %v114_v36 = vmul.f32 1.442695, %v91_v22 }
  0x1a   :  { %408 = vpow2.f32 %v104_v23  ;;  %v116_v37 = vmul.f32 1.442695, %v92_v24  ;;  %v118_v38 = vmul.f32 1.442695, %v93_v25  ;;  %v120_v44 = vmul.f32 1.442695, %v94_v27 }
  0x1b   :  { %410 = vpow2.f32 %v106_v26  ;;  %v631_v46 = vperm.slane %v187_v33, 4  ;;  %v122_v48 = vmul.f32 1.442695, %v95_v30  ;;  %v124_v49 = vmul.f32 1.442695, %v96_v31 }
  0x1c   :  { %412 = vpow2.f32 %v108_v28  ;;  %v634_v50 = vadd.s32 16, %v615_v29  ;;  %v126_v53 = vmul.f32 1.442695, %v97_v34  ;;  %vm198_vm2 = vcmp.eq.s32.totalorder %v629_v45, %v188_v39 }
  0x1d   :  { %v403_v43 = vpop.eup %402  ;;  %414 = vpow2.f32 %v110_v32  ;;  %vm195_vm4 = vcmp.eq.s32.totalorder %v615_v29, %v190_v41  ;;  %vm196_vm5 = vcmp.eq.s32.totalorder %v615_v29, %v626_v42  ;;  %vm197_vm6 = vcmp.eq.s32.totalorder %v615_v29, %v631_v46 }
  0x1e   :  { %v405_v47 = vpop.eup %404  ;;  %416 = vpow2.f32 %v112_v35  ;;  %vm199_vm7 = vcmp.eq.s32.totalorder %v629_v45, %v189_v40  ;;  %vm200_vm8 = vcmp.eq.s32.totalorder %v629_v45, %v190_v41  ;;  %vm201_vm9 = vcmp.eq.s32.totalorder %v629_v45, %v626_v42 }
  0x1f   :  { %v407_v51 = vpop.eup %406  ;;  %418 = vpow2.f32 %v114_v36  ;;  %vm203_vm10 = vcmp.eq.s32.totalorder %v634_v50, %v188_v39  ;;  %vm204_vm11 = vcmp.eq.s32.totalorder %v634_v50, %v189_v40  ;;  %vm205_vm12 = vcmp.eq.s32.totalorder %v634_v50, %v190_v41 }
  0x20   :  { %v409_v58 = vpop.eup %408  ;;  %420 = vpow2.f32 %v116_v37  ;;  %v208_v62 = vsel %vm193_vm1, %v486_v1, 0.0  ;;  %v209_v63 = vsel %vm194_vm3, %v491_v2, 0.0  ;;  %vm202_vm13 = vcmp.eq.s32.totalorder %v629_v45, %v631_v46 }
  0x21   :  { %v411_v59 = vpop.eup %410  ;;  %422 = vpow2.f32 %v118_v38  ;;  %v213_v16 = vsel %vm198_vm2, %v511_v6, 0.0  ;;  %v214_v17 = vsel %vm199_vm7, %v521_v8, 0.0  ;;  %v210_v2 = vsel %vm195_vm4, %v496_v3, 0.0 }
  0x22   :  { %v413_v60 = vpop.eup %412  ;;  %424 = vpow2.f32 %v120_v44  ;;  %v215_v22 = vsel %vm200_vm8, %v526_v9, 0.0  ;;  %vm206_vm14 = vcmp.eq.s32.totalorder %v634_v50, %v626_v42  ;;  %v218_v6 = vsel %vm203_vm10, %v545_v14, 0.0 }
  0x23   :  { %v415_v61 = vpop.eup %414  ;;  %426 = vpow2.f32 %v122_v48  ;;  %v128_v12 = vadd.f32 %v413_v60, %v403_v43  ;;  %v219_v8 = vsel %vm204_vm11, %v550_v15, 0.0  ;;  %v220_v3 = vsel %vm205_vm12, %v561_v19, 0.0 }
  0x24   :  { %v417_v11 = vpop.eup %416  ;;  %428 = vpow2.f32 %v124_v49  ;;  %v136_v1 = vadd.f32 %v415_v61, %v405_v47  ;;  %v223_v9 = vadd.f32 %v213_v16, %v208_v62  ;;  %v231_v27 = vadd.f32 %v214_v17, %v209_v63 }
  0x25   :  { %v419_v18 = vpop.eup %418  ;;  %430 = vpow2.f32 %v126_v53  ;;  %v144_v24 = vadd.f32 %v417_v11, %v407_v51  ;;  %v211_v14 = vsel %vm196_vm5, %v501_v4, 0.0  ;;  %v239_v32 = vadd.f32 %v215_v22, %v210_v2 }
  0x26   :  { %v421_v23 = vpop.eup %420  ;;  %v152_v26 = vadd.f32 %v419_v18, %v409_v58  ;;  %vm207_vm15 = vcmp.eq.s32.totalorder %v634_v50, %v631_v46  ;;  %v212_v15 = vsel %vm197_vm6, %v506_v5, 0.0  ;;  %v224_v19 = vadd.f32 %v223_v9, %v218_v6 }
  0x27   :  { %v423_v25 = vpop.eup %422  ;;  %v160_v31 = vadd.f32 %v421_v23, %v411_v59  ;;  %v232_v35 = vadd.f32 %v231_v27, %v219_v8  ;;  %v216_v4 = vsel %vm201_vm9, %v531_v10, 0.0  ;;  %v240_v39 = vadd.f32 %v239_v32, %v220_v3 }
  0x28   :  { %v425_v28 = vpop.eup %424  ;;  %v129_v30 = vadd.f32 %v423_v25, %v128_v12  ;;  %v225_v44 = vrot.slane %v224_v19, 4  ;;  %v217_v12 = vsel %vm202_vm13, %v540_v13, 0.0  ;;  %v247_v16 = vadd.f32 %v216_v4, %v211_v14 }
  0x29   :  { %v427_v33 = vpop.eup %426  ;;  %v137_v34 = vadd.f32 %v425_v28, %v136_v1  ;;  %v233_v47 = vrot.slane %v232_v35, 4  ;;  %v241_v5 = vrot.slane %v240_v39, 4  ;;  %v221_v2 = vsel %vm206_vm14, %v566_v20, 0.0 }
  0x2a   :  { %v429_v36 = vpop.eup %428  ;;  %v130_v37 = vrot.slane %v129_v30, 4  ;;  %v145_v38 = vadd.f32 %v427_v33, %v144_v24  ;;  %v226_v58 = vadd.f32 %v225_v44, %v224_v19  ;;  %v248_v13 = vadd.f32 %v247_v16, %v221_v2 }
  0x2b   :  { %v431_v40 = vpop.eup %430  ;;  %v138_v41 = vrot.slane %v137_v34, 4  ;;  %v153_v43 = vadd.f32 %v429_v36, %v152_v26  ;;  %v234_v59 = vadd.f32 %v233_v47, %v232_v35  ;;  %v242_v63 = vadd.f32 %v241_v5, %v240_v39 }
  0x2c   :  { %v131_v48 = vadd.f32 %v130_v37, %v129_v30  ;;  %v146_v49 = vrot.slane %v145_v38, 4  ;;  %v161_v29 = vadd.f32 %v431_v40, %v160_v31  ;;  %v227_v24 = vrot.slane %v226_v58, 2 }
  0x2d   :  { %v139_v51 = vadd.f32 %v138_v41, %v137_v34  ;;  %v154_v53 = vrot.slane %v153_v43, 4  ;;  %v235_v6 = vrot.slane %v234_v59, 2  ;;  %v243_v3 = vrot.slane %v242_v63, 2 }
  0x2e   :  { %v132_v60 = vrot.slane %v131_v48, 2  ;;  %v147_v61 = vadd.f32 %v146_v49, %v145_v38  ;;  %v162_v62 = vrot.slane %v161_v29, 4  ;;  %v255_v27 = vadd.f32 %v217_v12, %v212_v15 }
  0x2f   :  { %v140_v11 = vrot.slane %v139_v51, 2  ;;  %v155_v10 = vadd.f32 %v154_v53, %v153_v43  ;;  %v222_v20 = vsel %vm207_vm15, %v571_v21, 0.0  ;;  %v228_v32 = vadd.f32 %v227_v24, %v226_v58 }
  0x30   :  { %v133_v17 = vadd.f32 %v132_v60, %v131_v48  ;;  %v148_v18 = vrot.slane %v147_v61, 2  ;;  %v163_v1 = vadd.f32 %v162_v62, %v161_v29  ;;  %v236_v33 = vadd.f32 %v235_v6, %v234_v59 }
  0x31   :  { %v141_v22 = vadd.f32 %v140_v11, %v139_v51  ;;  %v156_v23 = vrot.slane %v155_v10, 2  ;;  %v244_v35 = vadd.f32 %v243_v3, %v242_v63  ;;  %v249_v37 = vrot.slane %v248_v13, 4 }
  0x32   :  { %v134_v8 = vrot.slane %v133_v17, 1  ;;  %v149_v25 = vadd.f32 %v148_v18, %v147_v61  ;;  %v164_v26 = vrot.slane %v163_v1, 2  ;;  %v256_v15 = vadd.f32 %v255_v27, %v222_v20  ;;  %v281_v27 = vld [vmem:[#allocation2] sm:$0x1f] }
  0x33   :  { %v142_v9 = vrot.slane %v141_v22, 1  ;;  %v157_v45 = vadd.f32 %v156_v23, %v155_v10  ;;  %v250_v4 = vadd.f32 %v249_v37, %v248_v13  ;;  %v229_v46 = vrot.slane %v228_v32, 1  ;;  %v351_v20 = vld [vmem:[%s740_s3] sm:$0x7] }
  0x34   :  { %v135_v28 = vadd.f32 %v134_v8, %v133_v17  ;;  %v150_v30 = vrot.slane %v149_v25, 1  ;;  %v165_v31 = vadd.f32 %v164_v26, %v163_v1  ;;  %v257_v39 = vrot.slane %v256_v15, 4 }
  0x35   :  { %v143_v42 = vadd.f32 %v142_v9, %v141_v22  ;;  %v158_v14 = vrot.slane %v157_v45, 1  ;;  %v237_v21 = vrot.slane %v236_v33, 1  ;;  %v245_v50 = vrot.slane %v244_v35, 1 }
  0x36   :  { %v151_v34 = vadd.f32 %v150_v30, %v149_v25  ;;  %v166_v19 = vrot.slane %v165_v31, 1  ;;  %432 = vlog2.f32 %v135_v28  ;;  %v251_v40 = vrot.slane %v250_v4, 2 }
  0x37   :  { %v159_v36 = vadd.f32 %v158_v14, %v157_v45  ;;  %434 = vlog2.f32 %v143_v42  ;;  %v258_v41 = vadd.f32 %v257_v39, %v256_v15  ;;  %v270_v44 = vand.u32 127, %v23_v0 }
  0x38   :  { %v167_v38 = vadd.f32 %v166_v19, %v165_v31  ;;  %436 = vlog2.f32 %v151_v34  ;;  %v252_v49 = vadd.f32 %v251_v40, %v250_v4  ;;  %v230_v53 = vadd.f32 %v229_v46, %v228_v32  ;;  %v401_v31 = vld [vmem:[%s740_s3 + $0x3] ss:$0 sm:$0xff] }
  0x39   :  { %438 = vlog2.f32 %v159_v36  ;;  %v259_v29 = vrot.slane %v258_v41, 2  ;;  %v238_v58 = vadd.f32 %v237_v21, %v236_v33  ;;  %v246_v59 = vadd.f32 %v245_v50, %v244_v35 }
  0x3a   :  { %440 = vlog2.f32 %v167_v38  ;;  %v253_v63 = vrot.slane %v252_v49, 1  ;;  %v274_v0 = vadd.s32 512, %v270_v44  ;;  %vm301_vm1 = vcmask 1040384  }
  0x3b   :  { %v260_v11 = vadd.f32 %v259_v29, %v258_v41  ;;  %vm303_vm3 = vcmask 1041408   ;;  %vm305_vm4 = vcmask 1043459   ;;  %vm307_vm5 = vcmask 1042432  }
  0x3c   :  { %v433_v43 = vpop.eup %432  ;;  %v254_v1 = vadd.f32 %v253_v63, %v252_v49  ;;  %vm286_vm2 = vcmp.lt.s32.totalorder %v274_v0, 520  ;;  %v354_v19 = vsub.f32 %v351_v20, %v401_v31  ;;  %vm361_vm6 = vcmask 18432  }
  0x3d   :  { %v435_v47 = vpop.eup %434  ;;  %v169_v48 = vmul.f32 0.6931472, %v433_v43  ;;  %v261_v2 = vrot.slane %v260_v11, 1 }
  0x3e   :  { %v437_v5 = vpop.eup %436  ;;  %v171_v51 = vmul.f32 0.6931472, %v435_v47  ;;  %v355_v39 = vand.u32 2147483647, %v354_v19  ;;  %v357_v46 = vmul.f32 0.5, %v354_v19 }
  0x3f   :  { %v439_v60 = vpop.eup %438  ;;  %v173_v61 = vmul.f32 0.6931472, %v437_v5  ;;  %v178_v62 = vadd.f32 %v169_v48, %v580_v52  ;;  %v262_v8 = vadd.f32 %v261_v2, %v260_v11 }
  0x40   :  { %v441_v10 = vpop.eup %440  ;;  %v175_v12 = vmul.f32 0.6931472, %v439_v60  ;;  %v179_v16 = vadd.f32 %v171_v51, %v582_v54  ;;  %v358_v41 = vmul.f32 %v357_v46, %v354_v19  ;;  %v394_v43 = vadd.f32 -0.5, %v355_v39 }
  0x41   :  { %v177_v17 = vmul.f32 0.6931472, %v441_v10  ;;  %v180_v18 = vadd.f32 %v173_v61, %v584_v55  ;;  %v263_v23 = vsub.f32 %v178_v62, %v230_v53 }
  0x42   :  { %v181_v22 = vadd.f32 %v175_v12, %v586_v56  ;;  %v264_v24 = vsub.f32 %v179_v16, %v238_v58 }
  0x43   :  { %v182_v6 = vadd.f32 %v177_v17, %v588_v57  ;;  %v265_v52 = vsub.f32 %v180_v18, %v246_v59 }
  0x44   :  { %v266_v25 = vsub.f32 %v181_v22, %v254_v1  ;;  %v297_v26 = vrot.slane %v264_v24, 7 }
  0x45   :  { %v267_v3 = vsub.f32 %v182_v6, %v262_v8  ;;  %v298_v54 = vrot.slane %v265_v52, 6 }
  0x46   :  { %v299_v9 = vrot.slane %v266_v25, 5  ;;  %v302_v55 = vsel %vm301_vm1, %v263_v23, %v297_v26 }
  0x47   :  { %v291_v45 = vsel %vm286_vm2, %v267_v3, 0.0  ;;  %v304_v56 = vsel %vm303_vm3, %v302_v55, %v298_v54 }
  0x48   :  { %v300_v13 = vrot.slane %v291_v45, 4 }
  0x4a   :  { %v306_v28 = vsel %vm305_vm4, %v299_v9, %v300_v13 }
  0x4b   :  { %v308_v57 = vsel %vm307_vm5, %v304_v56, %v306_v28 }
  0x4c   :  { %v310_v30 = vadd.f32 %v308_v57, %v281_v27 }
  0x4e   :  { %315 = vst.msk [vmem:[#allocation2] sm:$0x1f] %vm514_vm0, %v310_v30  ;;  %vm356_vm0 = vcmp.lt.f32.partialorder %v355_v39, 1.0 }
  0x4f   :  { %v360_v44 = vsel %vm356_vm0, %v358_v41, %v394_v43 }
  0x50   :  { %v362_v47 = vsel %vm361_vm6, %v360_v44, 0.0 }
  0x55   :  { %v320_v42 = vld [vmem:[#allocation2] sm:$0x1f] }
  0x56   :  { %v322_v14 = vperm.slane %v320_v42, 0  ;;  %v323_v32 = vperm.slane %v320_v42, 1  ;;  %v324_v33 = vperm.slane %v320_v42, 2  ;;  %v325_v34 = vperm.slane %v320_v42, 3 }
  0x57   :  { %v326_v35 = vperm.slane %v320_v42, 4 }
  0x58   :  { %v332_v36 = vsel %vm301_vm1, %v322_v14, 0.0  ;;  %v333_v7 = vsel %vm301_vm1, %v323_v32, 0.0  ;;  %v335_v37 = vsel %vm301_vm1, %v324_v33, 0.0  ;;  %v337_v38 = vsel %vm301_vm1, %v325_v34, 0.0 }
  0x59   :  { %v334_v15 = vadd.f32 %v333_v7, %v332_v36  ;;  %v339_v21 = vsel %vm301_vm1, %v326_v35, 0.0 }
  0x5b   :  { %v336_v4 = vadd.f32 %v335_v37, %v334_v15 }
  0x5d   :  { %v338_v50 = vadd.f32 %v337_v38, %v336_v4 }
  0x5f   :  { %v340_v40 = vadd.f32 %v339_v21, %v338_v50 }
  0x61   :  { %341 = vadd.xlane.f32.xlu0 %v340_v40 }
  0x69   :  { %363 = vadd.xlane.f32.xlu0 %v362_v47 }
  0xd4   :  { %v342_v48 = vpop.xlane.xlu0 %341 }
  0xd5   :  { %v343_v49 = vrot.slane %v342_v48, 4 }
  0xd7   :  { %v344_v29 = vadd.f32 %v343_v49, %v342_v48 }
  0xd9   :  { %v345_v5 = vrot.slane %v344_v29, 2 }
  0xdb   :  { %v346_v51 = vadd.f32 %v345_v5, %v344_v29 }
  0xdc   :  { %v364_v53 = vpop.xlane.xlu0 %363 }
  0xdd   :  { %v365_v58 = vrot.slane %v364_v53, 4  ;;  %v347_v59 = vrot.slane %v346_v51, 1 }
  0xdf   :  { %v366_v60 = vadd.f32 %v365_v58, %v364_v53  ;;  %v348_v61 = vadd.f32 %v347_v59, %v346_v51 }
  0xe1   :  { %v367_v62 = vrot.slane %v366_v60, 2  ;;  %395 = vpush %v348_v61 }
  0xe3   :  { %v368_v63 = vadd.f32 %v367_v62, %v366_v60 }
  0xe5   :  { %v369_v11 = vrot.slane %v368_v63, 1 }
  0xe7   :  { %v370_v10 = vadd.f32 %v369_v11, %v368_v63 }
  0xe9   :  { %397 = vpush %v370_v10 }
 0x112   :  { %s396_s3 = spop %395 }
 0x113   :  { %s350_s23 = smul.f32 0.0019230769, %s396_s3 }
 0x115   :  { %s373_s8 = smul.f32 %s350_s23, %s737_s0 }
 0x11a   :  { %s398_s27 = spop %397 }
 0x11b   :  { %s372_s28 = smul.f32 0.11111111, %s398_s27 }
 0x11d   :  { %s375_s9 = smul.f32 %s374_s26, %s372_s28 }
 0x11f   :  { %s376_s10 = sadd.f32 %s375_s9, %s373_s8 }
 0x121   :  { %378 = sst [smem:[#allocation4]] %s376_s10 }
 0x122   :  { %387 = dma.smem_to_hbm %s457_s11, 16, %s385_s5, [#allocation5]  }
 0x123   :  { %454 = dma.done.wait [#allocation5], 16  }
 0x124   :  { %455 = vsyncadd [#allocation5], 4294967280 }
 0x125   :  { %392 = sfence }
 0x126   :  { %393 = vsyncpa [#allocation5], 1 }

</bundles_post_ra>
